<compile_context>
chip_gen: v7x
topology: tpu7x:2x2x1
jax: 0.10.0
libtpu: 0.0.40
codegen_flags: <defaults>
</compile_context>

<pallas_src>
import functools

import jax
import jax.numpy as jnp
import numpy as np
from jax.experimental import pallas as pl
from jax.experimental.pallas import tpu as pltpu


def _silu(x):
    # silu(x) = x * sigmoid(x); sigmoid via one EUP tanh: 0.5*(tanh(x/2)+1)
    return 0.5 * x * (jnp.tanh(0.5 * x) + 1.0)


def schnet_conv_kernel(bf_ref, h_src_ref, h_edge_ref, cutoff_ref,
                       w1_ref, b1_ref, w2_ref, b2_ref,
                       w3_ref, b3_ref, w4_ref, b4_ref,
                       out_ref):
    TN, K = cutoff_ref.shape           # nodes in this block, neighbors
    F = out_ref.shape[-1]

    # ---- FGN_MLP1 / FGN_MLP2 on radial basis features (bf16 MXU, f32 acc) ----
    h1 = jnp.dot(bf_ref[...], w1_ref[...],
                 preferred_element_type=jnp.float32) + b1_ref[...]
    h1 = _silu(h1)                                            # (TN*K, H) f32
    h2 = jnp.dot(h1.astype(jnp.bfloat16), w2_ref[...],
                 preferred_element_type=jnp.float32) + b2_ref[...]
    bf2 = _silu(h2)                                           # (TN*K, F) f32

    # ---- message product (f32 elementwise) + mean over neighbors ----
    prod = (h_src_ref[...].astype(jnp.float32) * bf2
            * h_edge_ref[...].astype(jnp.float32))            # (TN*K, F)
    prod = prod.reshape(TN, K, F) * cutoff_ref[...][:, :, None]
    h_mean = jnp.sum(prod, axis=1) * (1.0 / K)                # (TN, F)

    # ---- IB_MLP1 / IB_MLP2 ----
    o1 = _silu(jnp.dot(h_mean.astype(jnp.bfloat16), w3_ref[...],
                       preferred_element_type=jnp.float32) + b3_ref[...])
    o2 = _silu(jnp.dot(o1.astype(jnp.bfloat16), w4_ref[...],
                       preferred_element_type=jnp.float32) + b4_ref[...])
    out_ref[...] = o2.astype(out_ref.dtype)


def schnet_conv(bf, h, knn, h_edge, cutoff, params, *, block_n=256):
    """Fused SchnetConv forward (node-block tiled, bf16 matmuls, f32 accumulate)."""
    N, K, R = bf.shape
    F = h.shape[-1]
    H = params["w1"].shape[-1]

    # Effective node block: multiple of 8, no larger than (8-rounded) N.
    bn = min(block_n, pl.cdiv(N, 8) * 8)
    bn = max(8, (bn // 8) * 8)
    n_pad = pl.cdiv(N, bn) * bn
    pad = n_pad - N
    if pad:
        bf = jnp.pad(bf, ((0, pad), (0, 0), (0, 0)))
        knn = jnp.pad(knn, ((0, pad), (0, 0)))
        h_edge = jnp.pad(h_edge, ((0, pad), (0, 0), (0, 0)))
        cutoff = jnp.pad(cutoff, ((0, pad), (0, 0)))

    # Glue: neighbor gather (torch.index_select). bf16 so the HBM round-trip
    # of the gathered array is halved.
    h_src = jnp.take(h.astype(jnp.bfloat16), knn.reshape(-1), axis=0)  # (n_pad*K, F)

    # Lane-dense 2D slabs (feature dim last) for the kernel.
    bf_flat = bf.reshape(n_pad * K, R).astype(jnp.bfloat16)
    h_edge_flat = h_edge.reshape(n_pad * K, F).astype(jnp.bfloat16)
    cutoff = cutoff.astype(jnp.float32)

    bcast = lambda w: w.astype(jnp.bfloat16)
    w1, b1 = bcast(params["w1"]), params["b1"].astype(jnp.float32).reshape(1, H)
    w2, b2 = bcast(params["w2"]), params["b2"].astype(jnp.float32).reshape(1, F)
    w3, b3 = bcast(params["w3"]), params["b3"].astype(jnp.float32).reshape(1, F)
    w4, b4 = bcast(params["w4"]), params["b4"].astype(jnp.float32).reshape(1, F)

    grid = (n_pad // bn,)
    row_blk = lambda i: (i, 0)
    full2d = lambda i: (0, 0)

    out = pl.pallas_call(
        schnet_conv_kernel,
        out_shape=jax.ShapeDtypeStruct((n_pad, F), jnp.float32),
        grid_spec=pltpu.PrefetchScalarGridSpec(
            num_scalar_prefetch=0,
            grid=grid,
            in_specs=[
                pl.BlockSpec((bn * K, R), row_blk),   # bf      (bf16)
                pl.BlockSpec((bn * K, F), row_blk),   # h_src   (bf16)
                pl.BlockSpec((bn * K, F), row_blk),   # h_edge  (bf16)
                pl.BlockSpec((bn, K), row_blk),       # cutoff  (f32)
                pl.BlockSpec((R, H), full2d),         # w1
                pl.BlockSpec((1, H), full2d),         # b1
                pl.BlockSpec((H, F), full2d),         # w2
                pl.BlockSpec((1, F), full2d),         # b2
                pl.BlockSpec((F, F), full2d),         # w3
                pl.BlockSpec((1, F), full2d),         # b3
                pl.BlockSpec((F, F), full2d),         # w4
                pl.BlockSpec((1, F), full2d),         # b4
            ],
            out_specs=pl.BlockSpec((bn, F), row_blk),
        ),
        compiler_params=pltpu.CompilerParams(
            dimension_semantics=("parallel",),
            vmem_limit_bytes=32 * 1024 * 1024,
        ),
    )(bf_flat, h_src, h_edge_flat, cutoff, w1, b1, w2, b2, w3, b3, w4, b4)

    return out[:N]


def schnet_conv_ref(bf, h, knn, h_edge, cutoff, params):
    """Pure-JAX f32 reference matching the PyTorch forward."""
    def silu(x):
        return x * jax.nn.sigmoid(x)
    def mlp(x, w, b):
        return silu(x @ w + b)
    bf1 = mlp(bf, params["w1"], params["b1"])
    bf2 = mlp(bf1, params["w2"], params["b2"])
    N, K, F = h_edge.shape
    h_src = jnp.take(h, knn.reshape(-1), axis=0).reshape(N, K, F)
    hm = jnp.mean(h_src * bf2 * h_edge * cutoff[..., None], axis=-2)
    o1 = mlp(hm, params["w3"], params["b3"])
    return mlp(o1, params["w4"], params["b4"])


if __name__ == "__main__":
    # module defaults: in_feats=64, radial_feats=256, hidden_feats=128, out_feats=64
    N, K = 40, 8              # small node/neighbor counts
    R, H, F = 256, 128, 64    # radial, hidden, out feature dims

    key = jax.random.PRNGKey(0)
    ks = jax.random.split(key, 16)

    bf = jax.random.normal(ks[0], (N, K, R), jnp.float32)
    h = jax.random.normal(ks[1], (N, F), jnp.float32)
    knn = jax.random.randint(ks[2], (N, K), 0, N, jnp.int32)
    h_edge = jax.random.normal(ks[3], (N, K, F), jnp.float32)
    cutoff = jax.random.uniform(ks[4], (N, K), jnp.float32)

    def init_linear(kw, kb, fan_in, fan_out):
        s = 1.0 / np.sqrt(fan_in)
        w = jax.random.uniform(kw, (fan_in, fan_out), jnp.float32, -s, s)
        b = jax.random.uniform(kb, (fan_out,), jnp.float32, -s, s)
        return w, b

    params = {}
    params["w1"], params["b1"] = init_linear(ks[5], ks[6], R, H)    # FGN_MLP1
    params["w2"], params["b2"] = init_linear(ks[7], ks[8], H, F)    # FGN_MLP2
    params["w3"], params["b3"] = init_linear(ks[9], ks[10], F, F)   # IB_MLP1
    params["w4"], params["b4"] = init_linear(ks[11], ks[12], F, F)  # IB_MLP2

    # block_n=16 here so the small demo exercises multiple grid steps plus the
    # zero-padded tail block; production default is block_n=256.
    fn = jax.jit(functools.partial(schnet_conv, block_n=16))
    out = jax.block_until_ready(fn(bf, h, knn, h_edge, cutoff, params))

    ref = schnet_conv_ref(bf, h, knn, h_edge, cutoff, params)
    # bf16 matmul operands (f32 accumulation) vs. an f32 reference -> loose tol.
    np.testing.assert_allclose(np.asarray(out), np.asarray(ref),
                               rtol=5e-2, atol=5e-2)
    print("KERNEL_OK")
</pallas_src>

<mosaic_0001>
module attributes {stable_mosaic.version = 11 : i64} {
  func.func @schnet_conv_kernel(%arg0: i32, %arg1: memref<128x256xbf16, #tpu.memory_space<vmem>>, %arg2: memref<128x64xbf16, #tpu.memory_space<vmem>>, %arg3: memref<128x64xbf16, #tpu.memory_space<vmem>>, %arg4: memref<16x8xf32, #tpu.memory_space<vmem>>, %arg5: memref<256x128xbf16, #tpu.memory_space<vmem>>, %arg6: memref<1x128xf32, #tpu.memory_space<vmem>>, %arg7: memref<128x64xbf16, #tpu.memory_space<vmem>>, %arg8: memref<1x64xf32, #tpu.memory_space<vmem>>, %arg9: memref<64x64xbf16, #tpu.memory_space<vmem>>, %arg10: memref<1x64xf32, #tpu.memory_space<vmem>>, %arg11: memref<64x64xbf16, #tpu.memory_space<vmem>>, %arg12: memref<1x64xf32, #tpu.memory_space<vmem>>, %arg13: memref<16x64xf32, #tpu.memory_space<vmem>>) attributes {dimension_semantics = [#tpu.dimension_semantics<parallel>], iteration_bounds = array<i64: 3>, scalar_prefetch = 0 : i64, scratch_operands = 0 : i64, tpu.core_type = #tpu.core_type<tc>, window_params = [{transform_indices = @transform_0, window_bounds = array<i64: 128, 256>}, {transform_indices = @transform_1, window_bounds = array<i64: 128, 64>}, {transform_indices = @transform_2, window_bounds = array<i64: 128, 64>}, {transform_indices = @transform_3, window_bounds = array<i64: 16, 8>}, {pipeline_mode = #tpu.pipeline_mode<synchronous>, transform_indices = @transform_4, window_bounds = array<i64: 256, 128>}, {pipeline_mode = #tpu.pipeline_mode<synchronous>, transform_indices = @transform_5, window_bounds = array<i64: 1, 128>}, {pipeline_mode = #tpu.pipeline_mode<synchronous>, transform_indices = @transform_6, window_bounds = array<i64: 128, 64>}, {pipeline_mode = #tpu.pipeline_mode<synchronous>, transform_indices = @transform_7, window_bounds = array<i64: 1, 64>}, {pipeline_mode = #tpu.pipeline_mode<synchronous>, transform_indices = @transform_8, window_bounds = array<i64: 64, 64>}, {pipeline_mode = #tpu.pipeline_mode<synchronous>, transform_indices = @transform_9, window_bounds = array<i64: 1, 64>}, {pipeline_mode = #tpu.pipeline_mode<synchronous>, transform_indices = @transform_10, window_bounds = array<i64: 64, 64>}, {pipeline_mode = #tpu.pipeline_mode<synchronous>, transform_indices = @transform_11, window_bounds = array<i64: 1, 64>}, {transform_indices = @transform_12, window_bounds = array<i64: 16, 64>}]} {
    %c0 = arith.constant 0 : index
    %c0_0 = arith.constant 0 : index
    %0 = vector.load %arg1[%c0, %c0_0] : memref<128x256xbf16, #tpu.memory_space<vmem>>, vector<128x256xbf16>
    %c0_1 = arith.constant 0 : index
    %c0_2 = arith.constant 0 : index
    %1 = vector.load %arg5[%c0_1, %c0_2] : memref<256x128xbf16, #tpu.memory_space<vmem>>, vector<256x128xbf16>
    %cst = arith.constant dense<0.000000e+00> : vector<128x128xf32>
    %2 = tpu.matmul %0, %1, %cst {dimension_numbers = #tpu.dot_dimension_numbers<[1], [0], [0], [1], [0, 0, 1, 1], [], []>} : vector<128x256xbf16>, vector<256x128xbf16>, vector<128x128xf32> -> vector<128x128xf32>
    %c0_3 = arith.constant 0 : index
    %c0_4 = arith.constant 0 : index
    %3 = vector.load %arg6[%c0_3, %c0_4] : memref<1x128xf32, #tpu.memory_space<vmem>>, vector<1x128xf32>
    %4 = vector.broadcast %3 : vector<1x128xf32> to vector<128x128xf32>
    %5 = arith.addf %2, %4 : vector<128x128xf32>
    %cst_5 = arith.constant 5.000000e-01 : f32
    %6 = vector.broadcast %cst_5 : f32 to vector<128x128xf32>
    %7 = arith.mulf %6, %5 : vector<128x128xf32>
    %cst_6 = arith.constant 5.000000e-01 : f32
    %8 = vector.broadcast %cst_6 : f32 to vector<128x128xf32>
    %9 = arith.mulf %8, %5 : vector<128x128xf32>
    %10 = math.tanh %9 : vector<128x128xf32>
    %cst_7 = arith.constant 1.000000e+00 : f32
    %11 = vector.broadcast %cst_7 : f32 to vector<128x128xf32>
    %12 = arith.addf %10, %11 : vector<128x128xf32>
    %13 = arith.mulf %7, %12 : vector<128x128xf32>
    %14 = arith.truncf %13 : vector<128x128xf32> to vector<128x128xbf16>
    %c0_8 = arith.constant 0 : index
    %c0_9 = arith.constant 0 : index
    %15 = vector.load %arg7[%c0_8, %c0_9] : memref<128x64xbf16, #tpu.memory_space<vmem>>, vector<128x64xbf16>
    %cst_10 = arith.constant dense<0.000000e+00> : vector<128x64xf32>
    %16 = tpu.matmul %14, %15, %cst_10 {dimension_numbers = #tpu.dot_dimension_numbers<[1], [0], [0], [1], [0, 0, 1, 1], [], []>} : vector<128x128xbf16>, vector<128x64xbf16>, vector<128x64xf32> -> vector<128x64xf32>
    %c0_11 = arith.constant 0 : index
    %c0_12 = arith.constant 0 : index
    %17 = vector.load %arg8[%c0_11, %c0_12] : memref<1x64xf32, #tpu.memory_space<vmem>>, vector<1x64xf32>
    %18 = vector.broadcast %17 : vector<1x64xf32> to vector<128x64xf32>
    %19 = arith.addf %16, %18 : vector<128x64xf32>
    %cst_13 = arith.constant 5.000000e-01 : f32
    %20 = vector.broadcast %cst_13 : f32 to vector<128x64xf32>
    %21 = arith.mulf %20, %19 : vector<128x64xf32>
    %cst_14 = arith.constant 5.000000e-01 : f32
    %22 = vector.broadcast %cst_14 : f32 to vector<128x64xf32>
    %23 = arith.mulf %22, %19 : vector<128x64xf32>
    %24 = math.tanh %23 : vector<128x64xf32>
    %cst_15 = arith.constant 1.000000e+00 : f32
    %25 = vector.broadcast %cst_15 : f32 to vector<128x64xf32>
    %26 = arith.addf %24, %25 : vector<128x64xf32>
    %27 = arith.mulf %21, %26 : vector<128x64xf32>
    %c0_16 = arith.constant 0 : index
    %c0_17 = arith.constant 0 : index
    %28 = vector.load %arg2[%c0_16, %c0_17] : memref<128x64xbf16, #tpu.memory_space<vmem>>, vector<128x64xbf16>
    %29 = arith.extf %28 : vector<128x64xbf16> to vector<128x64xf32>
    %30 = arith.mulf %29, %27 : vector<128x64xf32>
    %c0_18 = arith.constant 0 : index
    %c0_19 = arith.constant 0 : index
    %31 = vector.load %arg3[%c0_18, %c0_19] : memref<128x64xbf16, #tpu.memory_space<vmem>>, vector<128x64xbf16>
    %32 = arith.extf %31 : vector<128x64xbf16> to vector<128x64xf32>
    %33 = arith.mulf %30, %32 : vector<128x64xf32>
    %34 = vector.shape_cast %33 : vector<128x64xf32> to vector<16x8x64xf32>
    %c0_20 = arith.constant 0 : index
    %c0_21 = arith.constant 0 : index
    %35 = vector.load %arg4[%c0_20, %c0_21] : memref<16x8xf32, #tpu.memory_space<vmem>>, vector<16x8xf32>
    %36 = vector.shape_cast %35 : vector<16x8xf32> to vector<16x8x1xf32>
    %37 = vector.broadcast %36 : vector<16x8x1xf32> to vector<16x8x64xf32>
    %38 = arith.mulf %34, %37 : vector<16x8x64xf32>
    %cst_22 = arith.constant dense<0.000000e+00> : vector<16x64xf32>
    %39 = vector.multi_reduction <add>, %38, %cst_22 [1] : vector<16x8x64xf32> to vector<16x64xf32>
    %cst_23 = arith.constant 1.250000e-01 : f32
    %40 = vector.broadcast %cst_23 : f32 to vector<16x64xf32>
    %41 = arith.mulf %39, %40 : vector<16x64xf32>
    %42 = arith.truncf %41 : vector<16x64xf32> to vector<16x64xbf16>
    %c0_24 = arith.constant 0 : index
    %c0_25 = arith.constant 0 : index
    %43 = vector.load %arg9[%c0_24, %c0_25] : memref<64x64xbf16, #tpu.memory_space<vmem>>, vector<64x64xbf16>
    %cst_26 = arith.constant dense<0.000000e+00> : vector<16x64xf32>
    %44 = tpu.matmul %42, %43, %cst_26 {dimension_numbers = #tpu.dot_dimension_numbers<[1], [0], [0], [1], [0, 0, 1, 1], [], []>} : vector<16x64xbf16>, vector<64x64xbf16>, vector<16x64xf32> -> vector<16x64xf32>
    %c0_27 = arith.constant 0 : index
    %c0_28 = arith.constant 0 : index
    %45 = vector.load %arg10[%c0_27, %c0_28] : memref<1x64xf32, #tpu.memory_space<vmem>>, vector<1x64xf32>
    %46 = vector.broadcast %45 : vector<1x64xf32> to vector<16x64xf32>
    %47 = arith.addf %44, %46 : vector<16x64xf32>
    %cst_29 = arith.constant 5.000000e-01 : f32
    %48 = vector.broadcast %cst_29 : f32 to vector<16x64xf32>
    %49 = arith.mulf %48, %47 : vector<16x64xf32>
    %cst_30 = arith.constant 5.000000e-01 : f32
    %50 = vector.broadcast %cst_30 : f32 to vector<16x64xf32>
    %51 = arith.mulf %50, %47 : vector<16x64xf32>
    %52 = math.tanh %51 : vector<16x64xf32>
    %cst_31 = arith.constant 1.000000e+00 : f32
    %53 = vector.broadcast %cst_31 : f32 to vector<16x64xf32>
    %54 = arith.addf %52, %53 : vector<16x64xf32>
    %55 = arith.mulf %49, %54 : vector<16x64xf32>
    %56 = arith.truncf %55 : vector<16x64xf32> to vector<16x64xbf16>
    %c0_32 = arith.constant 0 : index
    %c0_33 = arith.constant 0 : index
    %57 = vector.load %arg11[%c0_32, %c0_33] : memref<64x64xbf16, #tpu.memory_space<vmem>>, vector<64x64xbf16>
    %cst_34 = arith.constant dense<0.000000e+00> : vector<16x64xf32>
    %58 = tpu.matmul %56, %57, %cst_34 {dimension_numbers = #tpu.dot_dimension_numbers<[1], [0], [0], [1], [0, 0, 1, 1], [], []>} : vector<16x64xbf16>, vector<64x64xbf16>, vector<16x64xf32> -> vector<16x64xf32>
    %c0_35 = arith.constant 0 : index
    %c0_36 = arith.constant 0 : index
    %59 = vector.load %arg12[%c0_35, %c0_36] : memref<1x64xf32, #tpu.memory_space<vmem>>, vector<1x64xf32>
    %60 = vector.broadcast %59 : vector<1x64xf32> to vector<16x64xf32>
    %61 = arith.addf %58, %60 : vector<16x64xf32>
    %cst_37 = arith.constant 5.000000e-01 : f32
    %62 = vector.broadcast %cst_37 : f32 to vector<16x64xf32>
    %63 = arith.mulf %62, %61 : vector<16x64xf32>
    %cst_38 = arith.constant 5.000000e-01 : f32
    %64 = vector.broadcast %cst_38 : f32 to vector<16x64xf32>
    %65 = arith.mulf %64, %61 : vector<16x64xf32>
    %66 = math.tanh %65 : vector<16x64xf32>
    %cst_39 = arith.constant 1.000000e+00 : f32
    %67 = vector.broadcast %cst_39 : f32 to vector<16x64xf32>
    %68 = arith.addf %66, %67 : vector<16x64xf32>
    %69 = arith.mulf %63, %68 : vector<16x64xf32>
    %c0_40 = arith.constant 0 : index
    %c0_41 = arith.constant 0 : index
    %70 = vector.load %arg13[%c0_40, %c0_41] : memref<16x64xf32, #tpu.memory_space<vmem>>, vector<16x64xf32>
    tpu.vector_store %arg13[%c0_40, %c0_41], %69 {strides = array<i32>} : memref<16x64xf32, #tpu.memory_space<vmem>>, vector<16x64xf32>,
    return
  }
  func.func @transform_0(%arg0: i32) -> (i32, i32) {
    %c0_i32 = arith.constant 0 : i32
    %c0_i32_0 = arith.constant 0 : i32
    return %arg0, %c0_i32 : i32, i32
  }
  func.func @transform_1(%arg0: i32) -> (i32, i32) {
    %c0_i32 = arith.constant 0 : i32
    %c0_i32_0 = arith.constant 0 : i32
    return %arg0, %c0_i32 : i32, i32
  }
  func.func @transform_2(%arg0: i32) -> (i32, i32) {
    %c0_i32 = arith.constant 0 : i32
    %c0_i32_0 = arith.constant 0 : i32
    return %arg0, %c0_i32 : i32, i32
  }
  func.func @transform_3(%arg0: i32) -> (i32, i32) {
    %c0_i32 = arith.constant 0 : i32
    %c0_i32_0 = arith.constant 0 : i32
    return %arg0, %c0_i32 : i32, i32
  }
  func.func @transform_4(%arg0: i32) -> (i32, i32) {
    %c0_i32 = arith.constant 0 : i32
    %c0_i32_0 = arith.constant 0 : i32
    %c0_i32_1 = arith.constant 0 : i32
    return %c0_i32, %c0_i32_0 : i32, i32
  }
  func.func @transform_5(%arg0: i32) -> (i32, i32) {
    %c0_i32 = arith.constant 0 : i32
    %c0_i32_0 = arith.constant 0 : i32
    %c0_i32_1 = arith.constant 0 : i32
    return %c0_i32, %c0_i32_0 : i32, i32
  }
  func.func @transform_6(%arg0: i32) -> (i32, i32) {
    %c0_i32 = arith.constant 0 : i32
    %c0_i32_0 = arith.constant 0 : i32
    %c0_i32_1 = arith.constant 0 : i32
    return %c0_i32, %c0_i32_0 : i32, i32
  }
  func.func @transform_7(%arg0: i32) -> (i32, i32) {
    %c0_i32 = arith.constant 0 : i32
    %c0_i32_0 = arith.constant 0 : i32
    %c0_i32_1 = arith.constant 0 : i32
    return %c0_i32, %c0_i32_0 : i32, i32
  }
  func.func @transform_8(%arg0: i32) -> (i32, i32) {
    %c0_i32 = arith.constant 0 : i32
    %c0_i32_0 = arith.constant 0 : i32
    %c0_i32_1 = arith.constant 0 : i32
    return %c0_i32, %c0_i32_0 : i32, i32
  }
  func.func @transform_9(%arg0: i32) -> (i32, i32) {
    %c0_i32 = arith.constant 0 : i32
    %c0_i32_0 = arith.constant 0 : i32
    %c0_i32_1 = arith.constant 0 : i32
    return %c0_i32, %c0_i32_0 : i32, i32
  }
  func.func @transform_10(%arg0: i32) -> (i32, i32) {
    %c0_i32 = arith.constant 0 : i32
    %c0_i32_0 = arith.constant 0 : i32
    %c0_i32_1 = arith.constant 0 : i32
    return %c0_i32, %c0_i32_0 : i32, i32
  }
  func.func @transform_11(%arg0: i32) -> (i32, i32) {
    %c0_i32 = arith.constant 0 : i32
    %c0_i32_0 = arith.constant 0 : i32
    %c0_i32_1 = arith.constant 0 : i32
    return %c0_i32, %c0_i32_0 : i32, i32
  }
  func.func @transform_12(%arg0: i32) -> (i32, i32) {
    %c0_i32 = arith.constant 0 : i32
    %c0_i32_0 = arith.constant 0 : i32
    return %arg0, %c0_i32 : i32, i32
  }
}

</mosaic_0001>

<bundles_post_ra>
// kernel: schnet_conv.1
= control target key start
LH: loop header
LB: loop body
LE: loop exit
PB: predicated region body
PF: predicated region fallthrough
CT: control target
= control target key end

     0   :  { %s2331_s21 = smov 0   ;;  %s2769_s0 = inlined_call_operand.vmem [shape: bf16[384,256], index: 0, kind: input, shape index: {}]   ;;  %s2770_s1 = inlined_call_operand.vmem [shape: bf16[384,64], index: 1, kind: input, shape index: {}]   ;;  %s2771_s2 = inlined_call_operand.vmem [shape: bf16[384,64], index: 2, kind: input, shape index: {}]   ;;  %s2772_s3 = inlined_call_operand.vmem [shape: f32[48,8], index: 3, kind: input, shape index: {}]   ;;  %s2773_s4 = inlined_call_operand.vmem [shape: bf16[256,128], index: 4, kind: input, shape index: {}]   ;;  %s2774_s5 = inlined_call_operand.vmem [shape: f32[1,128], index: 5, kind: input, shape index: {}]   ;;  %s2775_s6 = inlined_call_operand.vmem [shape: bf16[128,64], index: 6, kind: input, shape index: {}]   ;;  %s2776_s7 = inlined_call_operand.vmem [shape: f32[1,64], index: 7, kind: input, shape index: {}]   ;;  %s2777_s8 = inlined_call_operand.vmem [shape: bf16[64,64], index: 8, kind: input, shape index: {}]   ;;  %s2778_s9 = inlined_call_operand.vmem [shape: f32[1,64], index: 9, kind: input, shape index: {}]   ;;  %s2779_s10 = inlined_call_operand.vmem [shape: bf16[64,64], index: 10, kind: input, shape index: {}]   ;;  %s2780_s11 = inlined_call_operand.vmem [shape: f32[1,64], index: 11, kind: input, shape index: {}]   ;;  %s2781_s12 = inlined_call_operand.vmem [shape: f32[48,64], index: 12, kind: output, shape index: {}]  }
   0x1 LB: > { %s1821_s22 = sadd.s32 4294967295, %s2262_s21   ;;  %p1825_p0 = scmp.ge.s32.totalorder %s2262_s21, 1  ;;  %s2262_s21 = sphi %s2331_s21, %s22_s21  }
   0x2   : > { %p397_p1 = scmp.lt.s32.totalorder %s2262_s21, 4 }
   0x4   : > { %p398_p2 = pnand %p1825_p0, %p397_p1 }
   0x5   : > { %v2128_v0 = vld [vmem:[%s2773_s4 + $0x40] sm:$0xff] (!%p398_p2)   ;;  %s1826_s25 = sshll.u32 (!%p398_p2), %s1821_s22, 4  ;;  %v2130_v2 = vld [vmem:[%s2773_s4 + $0x48] sm:$0xff] (!%p398_p2)   ;;  %v2132_v4 = vld [vmem:[%s2773_s4 + $0x50] sm:$0xff] (!%p398_p2)   ;;  %s1833_s14 = sshll.u32 (!%p398_p2), %s1821_s22, 1  ;;  %v1217_v40 = vlaneseq (!%p398_p2)  ;;  %vm2265_vm0 = vmmov (!%p398_p2), 0  }
   0x6   : > { %401 = sbr.rel (%p398_p2) target bundleno = 1072 (0x430), region = 68  ;;  %v2129_v1 = vld [vmem:[%s2773_s4] sm:$0xff] (!%p398_p2)   ;;  %1972 = vmatprep.subr.bf16.mxu0 (!%p398_p2), %v2128_v0  ;;  %v2131_v3 = vld [vmem:[%s2773_s4 + $0x8] sm:$0xff] (!%p398_p2)   ;;  %p456_p3 = scmp.lt.s32.totalorder (!%p398_p2), %s1826_s25, 47  ;;  %v2133_v5 = vld [vmem:[%s2773_s4 + $0x10] sm:$0xff] (!%p398_p2)   ;;  %vm1345_vm1 = vcmask (!%p398_p2), 523264  }
   0x7   : > { %1973 = vmatpush3.bf16.msra.mxu0 (!%p398_p2), %v2129_v1  ;;  %v2134_v6 = vld [vmem:[%s2773_s4 + $0x58] sm:$0xff] (!%p398_p2)   ;;  %v2136_v8 = vld [vmem:[%s2773_s4 + $0x60] sm:$0xff] (!%p398_p2)   ;;  %v2138_v10 = vld [vmem:[%s2773_s4 + $0x68] sm:$0xff] (!%p398_p2)   ;;  %p475_p4 = scmp.lt.s32.totalorder (!%p398_p2), %s1833_s14, 5  ;;  %v1218_v41 = vshrl.u32 (!%p398_p2), %v1217_v40, 7  ;;  %vm1537_vm2 = vcmask (!%p398_p2), 1041409  }
   0x8   : > { %1974 = vmatprep.subr.bf16.mxu0 (!%p398_p2), %v2130_v2  ;;  %v2135_v7 = vld [vmem:[%s2773_s4 + $0x18] sm:$0xff] (!%p398_p2)   ;;  %v2137_v9 = vld [vmem:[%s2773_s4 + $0x20] sm:$0xff] (!%p398_p2)   ;;  %v2139_v12 = vld [vmem:[%s2773_s4 + $0x28] sm:$0xff] (!%p398_p2)   ;;  %vm1539_vm3 = vcmask (!%p398_p2), 1042434   ;;  %vm1541_vm4 = vcmask (!%p398_p2), 1043459   ;;  %vm1543_vm5 = vcmask (!%p398_p2), 1044484  }
   0x9   : > { %v2140_v13 = vld [vmem:[%s2773_s4 + $0x70] sm:$0xff] (!%p398_p2)   ;;  %v2142_v15 = vld [vmem:[%s2773_s4 + $0x78] sm:$0xff] (!%p398_p2)   ;;  %v2168_v32 = vld [vmem:[%s2775_s6] sm:$0xff] (!%p398_p2)   ;;  %v1219_v42 = vsub.s32 (!%p398_p2), 0, %v1218_v41  ;;  %v1226_v43 = vsub.s32 (!%p398_p2), 1, %v1218_v41  ;;  %v1233_v48 = vsub.s32 (!%p398_p2), 2, %v1218_v41 }
   0xa   : > { %v2141_v14 = vld [vmem:[%s2773_s4 + $0x30] sm:$0xff] (!%p398_p2)   ;;  %v2143_v16 = vld [vmem:[%s2773_s4 + $0x38] sm:$0xff] (!%p398_p2)   ;;  %2062 = vmatprep.subr.bf16.mxu1 (!%p398_p2), %v2168_v32  ;;  %v2169_v33 = vld [vmem:[%s2775_s6 + $0x8] sm:$0xff] (!%p398_p2)   ;;  %v1240_v52 = vsub.s32 (!%p398_p2), 3, %v1218_v41  ;;  %v1247_v55 = vsub.s32 (!%p398_p2), 4, %v1218_v41  ;;  %v1254_v58 = vsub.s32 (!%p398_p2), 5, %v1218_v41 }
   0xb   : > { %1975 = vmatpush3.bf16.msra.mxu0 (!%p398_p2), %v2131_v3  ;;  %2063 = vmatpush3.bf16.msra.mxu1 (!%p398_p2), %v2168_v32  ;;  %v2170_v34 = vld [vmem:[%s2775_s6 + $0x10] sm:$0xff] (!%p398_p2)   ;;  %v2171_v35 = vld [vmem:[%s2775_s6 + $0x18] sm:$0xff] (!%p398_p2)   ;;  %v2172_v36 = vld [vmem:[%s2775_s6 + $0x20] sm:$0xff] (!%p398_p2)   ;;  %v1261_v61 = vsub.s32 (!%p398_p2), 6, %v1218_v41  ;;  %v1268_v0 = vsub.s32 (!%p398_p2), 7, %v1218_v41  ;;  %vm1545_vm6 = vcmask (!%p398_p2), 1045509  }
   0xc   : > { %1976 = vmatprep.subr.bf16.mxu0 (!%p398_p2), %v2132_v4  ;;  %2064 = vmatprep.subr.bf16.mxu1 (!%p398_p2), %v2169_v33  ;;  %v2173_v37 = vld [vmem:[%s2775_s6 + $0x28] sm:$0xff] (!%p398_p2)   ;;  %v2174_v38 = vld [vmem:[%s2775_s6 + $0x30] sm:$0xff] (!%p398_p2)   ;;  %v2175_v39 = vld [vmem:[%s2775_s6 + $0x38] sm:$0xff] (!%p398_p2)   ;;  %vm1547_vm7 = vcmask (!%p398_p2), 1046534   ;;  %vm1549_vm8 = vcmask (!%p398_p2), 1047559  }
   0xd   : > { %s2786_s25 = smov (!%p456_p3, %s1826_s25), 47  ;;  %s2788_s14 = smov (!%p475_p4, %s1833_s14), 5 }
   0xe   : > { %s1893_s24 = sshll.u32 %s2786_s25, 3  ;;  %s1834_s15 = sshll.u32 %s2788_s14, 3 }
   0xf   : > { %1977 = vmatpush3.bf16.msra.mxu0 %v2133_v5  ;;  %s2374_s30 = scalar_lea.vmem %s2769_s0, %s1893_s24  ;;  %2065 = vmatpush3.bf16.msra.mxu1 %v2169_v33  ;;  %s478_s18 = scalar_lea.vmem %s2772_s3, %s1834_s15  ;;  %v2450_v5 = vld [vmem:[%s2774_s5] ss:$0 sm:$0xff] }
  0x10   : > { %1978 = vmatprep.subr.bf16.mxu0 %v2134_v6  ;;  %v2146_v11 = vld [vmem:[%s2374_s30 + $0x4] ss:$8 sps:$4 sm:$0xff]   ;;  %v2144_v17 = vld [vmem:[%s2374_s30] ss:$8 sps:$4 sm:$0xff]   ;;  %v2147_v18 = vld [vmem:[%s2374_s30 + $0x14] ss:$8 sps:$4 sm:$0xff]   ;;  %2066 = vmatprep.subr.bf16.mxu1 %v2170_v34 }
  0x11   : > { %750 = vmatprep.mubr.bf16.mxu0 %v2146_v11  ;;  %v2149_v19 = vld [vmem:[%s2374_s30 + $0x10] ss:$8 sps:$4 sm:$0xff]   ;;  %v2150_v20 = vld [vmem:[%s2374_s30 + $0x24] ss:$8 sps:$4 sm:$0xff]   ;;  %v2152_v21 = vld [vmem:[%s2374_s30 + $0x20] ss:$8 sps:$4 sm:$0xff]  }
  0x12   : > { %v2153_v22 = vld [vmem:[%s2374_s30 + $0x34] ss:$8 sps:$4 sm:$0xff]   ;;  %v2155_v23 = vld [vmem:[%s2374_s30 + $0x30] ss:$8 sps:$4 sm:$0xff]   ;;  %v2156_v24 = vld [vmem:[%s2374_s30 + $0x44] ss:$8 sps:$4 sm:$0xff]  }
  0x13   : > { %1979 = vmatpush3.bf16.msra.mxu0 %v2135_v7  ;;  %v2158_v25 = vld [vmem:[%s2374_s30 + $0x40] ss:$8 sps:$4 sm:$0xff]   ;;  %v2159_v26 = vld [vmem:[%s2374_s30 + $0x54] ss:$8 sps:$4 sm:$0xff]   ;;  %v2161_v27 = vld [vmem:[%s2374_s30 + $0x50] ss:$8 sps:$4 sm:$0xff]   ;;  %2067 = vmatpush3.bf16.msra.mxu1 %v2170_v34 }
  0x14   : > { %1980 = vmatprep.subr.bf16.mxu0 %v2136_v8  ;;  %v2162_v28 = vld [vmem:[%s2374_s30 + $0x64] ss:$8 sps:$4 sm:$0xff]   ;;  %v2164_v29 = vld [vmem:[%s2374_s30 + $0x60] ss:$8 sps:$4 sm:$0xff]   ;;  %v2165_v30 = vld [vmem:[%s2374_s30 + $0x74] ss:$8 sps:$4 sm:$0xff]   ;;  %2068 = vmatprep.subr.bf16.mxu1 %v2171_v35 }
  0x15   : > { %v2167_v31 = vld [vmem:[%s2374_s30 + $0x70] ss:$8 sps:$4 sm:$0xff]   ;;  %v1215_v44 = vld [vmem:[%s478_s18] sm:$0xff]  ;;  %v1216_v45 = vld [vmem:[%s478_s18 + $0x8] sm:$0xff]  ;;  %s1830_s17 = sshll.u32 %s2786_s25, 2 }
  0x16   : > { %v1220_v46 = vrot.slane %v1215_v44, %v1219_v42  ;;  %v1227_v47 = vrot.slane %v1215_v44, %v1226_v43  ;;  %v1276_v49 = vrot.slane %v1216_v45, %v1219_v42  ;;  %v1283_v50 = vrot.slane %v1216_v45, %v1226_v43  ;;  %s2502_s30 = scalar_lea.vmem %s2770_s1, %s1830_s17  ;;  %s2507_s23 = scalar_lea.vmem %s2771_s2, %s1830_s17 }
  0x17   : > { %1981 = vmatpush3.bf16.msra.mxu0 %v2137_v9  ;;  %2069 = vmatpush3.bf16.msra.mxu1 %v2171_v35  ;;  %v1234_v51 = vrot.slane %v1215_v44, %v1233_v48  ;;  %v1290_v53 = vrot.slane %v1216_v45, %v1233_v48  ;;  %v1241_v54 = vrot.slane %v1215_v44, %v1240_v52 }
  0x18   : > { %1982 = vmatprep.subr.bf16.mxu0 %v2138_v10  ;;  %2070 = vmatprep.subr.bf16.mxu1 %v2172_v36  ;;  %v1297_v56 = vrot.slane %v1216_v45, %v1240_v52  ;;  %v1248_v57 = vrot.slane %v1215_v44, %v1247_v55  ;;  %v1304_v59 = vrot.slane %v1216_v45, %v1247_v55 }
  0x19   : > { %1222 = vbcast.lane.b32.xlu0 %v1220_v46, 256  ;;  %1278 = vbcast.lane.b32.xlu1 %v1276_v49, 256  ;;  %v1255_v60 = vrot.slane %v1215_v44, %v1254_v58  ;;  %v1311_v62 = vrot.slane %v1216_v45, %v1254_v58  ;;  %v1262_v63 = vrot.slane %v1215_v44, %v1261_v61 }
  0x1a   : > { %v1318_v1 = vrot.slane %v1216_v45, %v1261_v61  ;;  %v1269_v2 = vrot.slane %v1215_v44, %v1268_v0  ;;  %v1325_v3 = vrot.slane %v1216_v45, %v1268_v0 }
  0x1b   : > { %1983 = vmatpush3.bf16.msra.mxu0 %v2139_v12  ;;  %2071 = vmatpush3.bf16.msra.mxu1 %v2172_v36 }
  0x1c   : > { %1984 = vmatprep.subr.bf16.mxu0 %v2140_v13  ;;  %2072 = vmatprep.subr.bf16.mxu1 %v2173_v37 }
  0x1d   : > { %1229 = vbcast.lane.b32.xlu0 %v1227_v47, 256  ;;  %1285 = vbcast.lane.b32.xlu1 %v1283_v50, 256 }
  0x1f   : > { %1985 = vmatpush3.bf16.msra.mxu0 %v2141_v14  ;;  %2073 = vmatpush3.bf16.msra.mxu1 %v2173_v37 }
  0x20   : > { %1986 = vmatprep.subr.bf16.mxu0 %v2142_v15  ;;  %2074 = vmatprep.subr.bf16.mxu1 %v2174_v38 }
  0x21   : > { %1236 = vbcast.lane.b32.xlu0 %v1234_v51, 256  ;;  %1292 = vbcast.lane.b32.xlu1 %v1290_v53, 256 }
  0x23   : > { %1987 = vmatpush3.bf16.msra.mxu0 %v2143_v16  ;;  %2075 = vmatpush3.bf16.msra.mxu1 %v2174_v38 }
  0x24   : > { %2076 = vmatprep.subr.bf16.mxu1 %v2175_v39 }
  0x25   : > { %1243 = vbcast.lane.b32.xlu0 %v1241_v54, 256  ;;  %1299 = vbcast.lane.b32.xlu1 %v1297_v56, 256 }
  0x26   : > { %751 = vmatmul.mubr.bf16.vlgmr.msra.gmra.mrb[0].mxu0 %v2144_v17 }
  0x27   : > { %758 = vmatprep.mubr.bf16.mxu0 %v2147_v18  ;;  %2077 = vmatpush3.bf16.msra.mxu1 %v2175_v39 }
  0x29   : > { %1250 = vbcast.lane.b32.xlu0 %v1248_v57, 256  ;;  %1306 = vbcast.lane.b32.xlu1 %v1304_v59, 256 }
  0x2d   : > { %1257 = vbcast.lane.b32.xlu0 %v1255_v60, 256  ;;  %1313 = vbcast.lane.b32.xlu1 %v1311_v62, 256 }
  0x2e   : > { %759 = vmatmul.mubr.bf16.gmra.mrb[4].mxu0 %v2149_v19 }
  0x2f   : > { %766 = vmatprep.mubr.bf16.mxu0 %v2150_v20 }
  0x31   : > { %1264 = vbcast.lane.b32.xlu0 %v1262_v63, 256  ;;  %1320 = vbcast.lane.b32.xlu1 %v1318_v1, 256 }
  0x35   : > { %1271 = vbcast.lane.b32.xlu0 %v1269_v2, 256  ;;  %1327 = vbcast.lane.b32.xlu1 %v1325_v3, 256 }
  0x36   : > { %767 = vmatmul.mubr.bf16.gmra.mrb[8].mxu0 %v2152_v21 }
  0x37   : > { %774 = vmatprep.mubr.bf16.mxu0 %v2153_v22 }
  0x3e   : > { %775 = vmatmul.mubr.bf16.gmra.mrb[12].mxu0 %v2155_v23 }
  0x3f   : > { %782 = vmatprep.mubr.bf16.mxu0 %v2156_v24 }
  0x46   : > { %783 = vmatmul.mubr.bf16.gmra.mrb[16].mxu0 %v2158_v25 }
  0x47   : > { %790 = vmatprep.mubr.bf16.mxu0 %v2159_v26 }
  0x4e   : > { %791 = vmatmul.mubr.bf16.gmra.mrb[20].mxu0 %v2161_v27 }
  0x4f   : > { %798 = vmatprep.mubr.bf16.mxu0 %v2162_v28 }
  0x56   : > { %799 = vmatmul.mubr.bf16.gmra.mrb[24].mxu0 %v2164_v29 }
  0x57   : > { %806 = vmatprep.mubr.bf16.mxu0 %v2165_v30 }
  0x5e   : > { %807 = vmatmul.mubr.bf16.gmra.mrb[28].mxu0 %v2167_v31 }
  0xf9   : > { %v1988_v4 = vpop.f32.mrb[0].mxu0 }
  0xfa   : > { %v1989_v6 = vpop.f32.mrb[1].mxu0 }
  0xfb   : > { %v1990_v7 = vadd.f32 %v1989_v6, %v1988_v4  ;;  %v1991_v8 = vpop.f32.mrb[2].mxu0 }
  0xfc   : > { %v1992_v9 = vpop.f32.mrb[3].mxu0 }
  0xfd   : > { %v753_v10 = vadd.f32 %v1990_v7, %v2450_v5  ;;  %v1993_v11 = vadd.f32 %v1992_v9, %v1991_v8 }
  0xff   : > { %v815_v12 = vmul.f32 0.5, %v753_v10  ;;  %v756_v13 = vadd.f32 %v1993_v11, %v2450_v5 }
 0x101   : > { %2184 = vtanh.f32 %v815_v12  ;;  %v816_v14 = vmul.f32 0.5, %v756_v13  ;;  %v1994_v15 = vpop.f32.mrb[4].mxu0 }
 0x102   : > { %v1995_v16 = vpop.f32.mrb[5].mxu0 }
 0x103   : > { %2186 = vtanh.f32 %v816_v14  ;;  %v1996_v17 = vadd.f32 %v1995_v16, %v1994_v15  ;;  %v1997_v18 = vpop.f32.mrb[6].mxu0 }
 0x104   : > { %v1998_v19 = vpop.f32.mrb[7].mxu0 }
 0x105   : > { %v761_v20 = vadd.f32 %v1996_v17, %v2450_v5  ;;  %v1999_v21 = vadd.f32 %v1998_v19, %v1997_v18 }
 0x107   : > { %v817_v22 = vmul.f32 0.5, %v761_v20  ;;  %v764_v23 = vadd.f32 %v1999_v21, %v2450_v5 }
 0x109   : > { %2188 = vtanh.f32 %v817_v22  ;;  %v818_v24 = vmul.f32 0.5, %v764_v23  ;;  %v2000_v25 = vpop.f32.mrb[8].mxu0 }
 0x10a   : > { %v2001_v26 = vpop.f32.mrb[9].mxu0 }
 0x10b   : > { %v2185_v27 = vpop.eup %2184  ;;  %2190 = vtanh.f32 %v818_v24  ;;  %v2002_v28 = vadd.f32 %v2001_v26, %v2000_v25  ;;  %v2003_v29 = vpop.f32.mrb[10].mxu0 }
 0x10c   : > { %v2004_v30 = vpop.f32.mrb[11].mxu0  ;;  %v847_v31 = vadd.f32 1.0, %v2185_v27 }
 0x10d   : > { %v2187_v32 = vpop.eup %2186  ;;  %v769_v33 = vadd.f32 %v2002_v28, %v2450_v5  ;;  %v2005_v34 = vadd.f32 %v2004_v30, %v2003_v29 }
 0x10e   : > { %v848_v35 = vadd.f32 1.0, %v2187_v32  ;;  %v863_v38 = vmul.f32 %v847_v31, %v815_v12 }
 0x10f   : > { %v819_v36 = vmul.f32 0.5, %v769_v33  ;;  %v772_v37 = vadd.f32 %v2005_v34, %v2450_v5 }
 0x110   : > { %v864_v39 = vmul.f32 %v848_v35, %v816_v14 }
 0x111   : > { %2192 = vtanh.f32 %v819_v36  ;;  %v820_v40 = vmul.f32 0.5, %v772_v37  ;;  %v2006_v41 = vpop.f32.mrb[12].mxu0 }
 0x112   : > { %v2007_v42 = vpop.f32.mrb[13].mxu0  ;;  %v879_v43 = vpack.c.bf16 %v864_v39, %v863_v38 }
 0x113   : > { %v2189_v44 = vpop.eup %2188  ;;  %2194 = vtanh.f32 %v820_v40  ;;  %v2008_v45 = vadd.f32 %v2007_v42, %v2006_v41  ;;  %v2009_v46 = vpop.f32.mrb[14].mxu0 }
 0x114   : > { %v849_v47 = vadd.f32 1.0, %v2189_v44  ;;  %v2010_v48 = vpop.f32.mrb[15].mxu0  ;;  %2078 = vmatprep.mubr.bf16.mxu1 %v879_v43 }
 0x115   : > { %v2191_v49 = vpop.eup %2190  ;;  %v777_v50 = vadd.f32 %v2008_v45, %v2450_v5  ;;  %v2011_v51 = vadd.f32 %v2010_v48, %v2009_v46 }
 0x116   : > { %v850_v52 = vadd.f32 1.0, %v2191_v49  ;;  %v865_v55 = vmul.f32 %v849_v47, %v817_v22 }
 0x117   : > { %v821_v53 = vmul.f32 0.5, %v777_v50  ;;  %v780_v54 = vadd.f32 %v2011_v51, %v2450_v5 }
 0x118   : > { %v866_v56 = vmul.f32 %v850_v52, %v818_v24 }
 0x119   : > { %2196 = vtanh.f32 %v821_v53  ;;  %v822_v57 = vmul.f32 0.5, %v780_v54  ;;  %v2012_v58 = vpop.f32.mrb[16].mxu0 }
 0x11a   : > { %v2013_v59 = vpop.f32.mrb[17].mxu0  ;;  %v880_v60 = vpack.c.bf16 %v866_v56, %v865_v55 }
 0x11b   : > { %v2193_v61 = vpop.eup %2192  ;;  %2198 = vtanh.f32 %v822_v57  ;;  %v2014_v62 = vadd.f32 %v2013_v59, %v2012_v58  ;;  %v2015_v63 = vpop.f32.mrb[18].mxu0 }
 0x11c   : > { %v851_v0 = vadd.f32 1.0, %v2193_v61  ;;  %v2016_v1 = vpop.f32.mrb[19].mxu0  ;;  %2079 = vmatmul.mubr.bf16.vlgmr.msra.gmra.mrb[0].mxu1 %v880_v60 }
 0x11d   : > { %v2195_v2 = vpop.eup %2194  ;;  %v785_v3 = vadd.f32 %v2014_v62, %v2450_v5  ;;  %v2017_v4 = vadd.f32 %v2016_v1, %v2015_v63 }
 0x11e   : > { %v852_v6 = vadd.f32 1.0, %v2195_v2  ;;  %v867_v9 = vmul.f32 %v851_v0, %v819_v36 }
 0x11f   : > { %v823_v7 = vmul.f32 0.5, %v785_v3  ;;  %v788_v8 = vadd.f32 %v2017_v4, %v2450_v5 }
 0x120   : > { %v868_v10 = vmul.f32 %v852_v6, %v820_v40 }
 0x121   : > { %2200 = vtanh.f32 %v823_v7  ;;  %v824_v11 = vmul.f32 0.5, %v788_v8  ;;  %v2018_v12 = vpop.f32.mrb[20].mxu0 }
 0x122   : > { %v2019_v13 = vpop.f32.mrb[21].mxu0  ;;  %v881_v14 = vpack.c.bf16 %v868_v10, %v867_v9 }
 0x123   : > { %v2197_v15 = vpop.eup %2196  ;;  %2202 = vtanh.f32 %v824_v11  ;;  %v2020_v16 = vadd.f32 %v2019_v13, %v2018_v12  ;;  %v2021_v17 = vpop.f32.mrb[22].mxu0 }
 0x124   : > { %v853_v18 = vadd.f32 1.0, %v2197_v15  ;;  %v2022_v19 = vpop.f32.mrb[23].mxu0  ;;  %2082 = vmatprep.mubr.bf16.mxu1 %v881_v14  ;;  %v2176_v14 = vld [vmem:[%s2777_s8] sm:$0xff]   ;;  %v2782_v15 = vmov 0.0  }
 0x125   : > { %v2199_v20 = vpop.eup %2198  ;;  %v793_v21 = vadd.f32 %v2020_v16, %v2450_v5  ;;  %v2023_v22 = vadd.f32 %v2022_v19, %v2021_v17  ;;  %2094 = vmatprep.subr.bf16.mxu1 %v2782_v15  ;;  %v2177_v16 = vld [vmem:[%s2777_s8 + $0x8] sm:$0xff]   ;;  %v2178_v17 = vld [vmem:[%s2777_s8 + $0x10] sm:$0xff]   ;;  %v2490_v19 = vld [vmem:[%s2776_s7] ss:$0 sm:$0xff] }
 0x126   : > { %v854_v23 = vadd.f32 1.0, %v2199_v20  ;;  %v869_v26 = vmul.f32 %v853_v18, %v821_v53  ;;  %2095 = vmatpush3.bf16.msra.mxu1 %v2176_v14  ;;  %v2179_v18 = vld [vmem:[%s2777_s8 + $0x18] sm:$0xff]  }
 0x127   : > { %v825_v24 = vmul.f32 0.5, %v793_v21  ;;  %v796_v25 = vadd.f32 %v2023_v22, %v2450_v5  ;;  %2096 = vmatprep.subr.bf16.mxu1 %v2782_v15 }
 0x128   : > { %v870_v27 = vmul.f32 %v854_v23, %v822_v57 }
 0x129   : > { %2204 = vtanh.f32 %v825_v24  ;;  %v826_v28 = vmul.f32 0.5, %v796_v25  ;;  %v2024_v29 = vpop.f32.mrb[24].mxu0 }
 0x12a   : > { %v2025_v30 = vpop.f32.mrb[25].mxu0  ;;  %v882_v31 = vpack.c.bf16 %v870_v27, %v869_v26  ;;  %2097 = vmatpush3.bf16.msra.mxu1 %v2177_v16  ;;  %v2544_v16 = vld [vmem:[%s2507_s23 + $0x18] sm:$0xff]  }
 0x12b   : > { %v2201_v32 = vpop.eup %2200  ;;  %2206 = vtanh.f32 %v826_v28  ;;  %v2026_v33 = vadd.f32 %v2025_v30, %v2024_v29  ;;  %v2027_v34 = vpop.f32.mrb[26].mxu0  ;;  %2098 = vmatprep.subr.bf16.mxu1 %v2782_v15 }
 0x12c   : > { %v855_v35 = vadd.f32 1.0, %v2201_v32  ;;  %v2028_v36 = vpop.f32.mrb[27].mxu0  ;;  %2083 = vmatmul.mubr.bf16.gmra.mrb[4].mxu1 %v882_v31  ;;  %v2496_v31 = vpop.permute.xlu0 %1222 }
 0x12d   : > { %v2203_v37 = vpop.eup %2202  ;;  %v801_v38 = vadd.f32 %v2026_v33, %v2450_v5  ;;  %v2029_v39 = vadd.f32 %v2028_v36, %v2027_v34  ;;  %v1895_v33 = vld [vmem:[%s2502_s30] sm:$0xff]   ;;  %v1965_v36 = vld [vmem:[%s2507_s23 + $0x8] sm:$0xff]  }
 0x12e   : > { %v856_v40 = vadd.f32 1.0, %v2203_v37  ;;  %v871_v43 = vmul.f32 %v855_v35, %v823_v7  ;;  %2099 = vmatpush3.bf16.msra.mxu1 %v2178_v17  ;;  %v1958_v35 = vld [vmem:[%s2502_s30 + $0x8] sm:$0xff]   ;;  %v2515_v37 = vld [vmem:[%s2507_s23] sm:$0xff]  }
 0x12f   : > { %v827_v41 = vmul.f32 0.5, %v801_v38  ;;  %v804_v42 = vadd.f32 %v2029_v39, %v2450_v5  ;;  %2100 = vmatprep.subr.bf16.mxu1 %v2782_v15  ;;  %v2518_v38 = vld [vmem:[%s2502_s30 + $0x10] sm:$0xff]   ;;  %v1896_v39 = vunpack.c.l.bf16 %v1895_v33 }
 0x130   : > { %v872_v44 = vmul.f32 %v856_v40, %v824_v11  ;;  %v2510_v34 = vpop.permute.xlu0 %1229  ;;  %v1900_v40 = vunpack.c.l.bf16 %v1958_v35 }
 0x131   : > { %2208 = vtanh.f32 %v827_v41  ;;  %v828_v45 = vmul.f32 0.5, %v804_v42  ;;  %v2030_v46 = vpop.f32.mrb[28].mxu0  ;;  %v2521_v42 = vld [vmem:[%s2507_s23 + $0x10] sm:$0xff]  }
 0x132   : > { %v2031_v47 = vpop.f32.mrb[29].mxu0  ;;  %v883_v48 = vpack.c.bf16 %v872_v44, %v871_v43  ;;  %2101 = vmatpush3.bf16.msra.mxu1 %v2179_v18  ;;  %v1928_v44 = vunpack.c.l.bf16 %v2515_v37 }
 0x133   : > { %v2205_v49 = vpop.eup %2204  ;;  %2210 = vtanh.f32 %v828_v45  ;;  %v2032_v50 = vadd.f32 %v2031_v47, %v2030_v46  ;;  %v2033_v51 = vpop.f32.mrb[30].mxu0  ;;  %2106 = vmatprep.subr.bf16.mxu1 %v2782_v15  ;;  %v1901_v46 = vunpack.c.h.bf16 %v1958_v35 }
 0x134   : > { %v857_v52 = vadd.f32 1.0, %v2205_v49  ;;  %v2034_v53 = vpop.f32.mrb[31].mxu0  ;;  %2086 = vmatprep.mubr.bf16.mxu1 %v883_v48 }
 0x135   : > { %v2207_v54 = vpop.eup %2206  ;;  %v809_v55 = vadd.f32 %v2032_v50, %v2450_v5  ;;  %v2035_v56 = vadd.f32 %v2034_v53, %v2033_v51  ;;  %v1929_v50 = vunpack.c.h.bf16 %v2515_v37  ;;  %v1933_v51 = vunpack.c.h.bf16 %v1965_v36  ;;  %v2566_v37 = vld [vmem:[%s2507_s23 + $0x20] sm:$0xff]  }
 0x136   : > { %v858_v57 = vadd.f32 1.0, %v2207_v54  ;;  %v873_v60 = vmul.f32 %v857_v52, %v825_v24  ;;  %v1904_v52 = vunpack.c.l.bf16 %v2518_v38 }
 0x137   : > { %v829_v58 = vmul.f32 0.5, %v809_v55  ;;  %v812_v59 = vadd.f32 %v2035_v56, %v2450_v5 }
 0x138   : > { %v874_v61 = vmul.f32 %v858_v57, %v826_v28  ;;  %v1237_v57 = vpop.permute.xlu0 %1236 }
 0x139   : > { %2212 = vtanh.f32 %v829_v58  ;;  %v830_v62 = vmul.f32 0.5, %v812_v59  ;;  %v1905_v59 = vunpack.c.h.bf16 %v2518_v38 }
 0x13a   : > { %v884_v63 = vpack.c.bf16 %v874_v61, %v873_v60 }
 0x13b   : > { %v2209_v0 = vpop.eup %2208  ;;  %2214 = vtanh.f32 %v830_v62 }
 0x13c   : > { %v859_v1 = vadd.f32 1.0, %v2209_v0  ;;  %2087 = vmatmul.mubr.bf16.gmra.mrb[8].mxu1 %v884_v63 }
 0x13d   : > { %v2211_v2 = vpop.eup %2210 }
 0x13e   : > { %v860_v3 = vadd.f32 1.0, %v2211_v2  ;;  %v875_v4 = vmul.f32 %v859_v1, %v827_v41  ;;  %v1932_v41 = vunpack.c.l.bf16 %v1965_v36  ;;  %v1937_v1 = vunpack.c.h.bf16 %v2521_v42 }
 0x13f   : > { %v1941_v36 = vunpack.c.h.bf16 %v2544_v16 }
 0x140   : > { %v876_v6 = vmul.f32 %v860_v3, %v828_v45  ;;  %v1897_v45 = vunpack.c.h.bf16 %v1895_v33 }
 0x142   : > { %v885_v7 = vpack.c.bf16 %v876_v6, %v875_v4 }
 0x143   : > { %v2213_v8 = vpop.eup %2212 }
 0x144   : > { %v861_v9 = vadd.f32 1.0, %v2213_v8  ;;  %2090 = vmatprep.mubr.bf16.mxu1 %v885_v7 }
 0x145   : > { %v2215_v10 = vpop.eup %2214 }
 0x146   : > { %v862_v11 = vadd.f32 1.0, %v2215_v10  ;;  %v877_v5 = vmul.f32 %v861_v9, %v829_v58  ;;  %v1936_v58 = vunpack.c.l.bf16 %v2521_v42 }
 0x148   : > { %v878_v12 = vmul.f32 %v862_v11, %v830_v62 }
 0x14a   : > { %v886_v13 = vpack.c.bf16 %v878_v12, %v877_v5  ;;  %v2538_v5 = vld [vmem:[%s2502_s30 + $0x18] sm:$0xff]  }
 0x14b   : > { %v1909_v35 = vunpack.c.h.bf16 %v2538_v5 }
 0x14c   : > { %2091 = vmatmul.mubr.bf16.gmra.mrb[12].mxu1 %v886_v13 }
 0x14d   : > { %2102 = vmatprep.mubr.msk.bf16.mxu1 %vm2265_vm0, %v2782_v15  ;;  %v2599_v15 = vpop.permute.xlu1 %1278 }
 0x1ef   : > { %v2080_v20 = vpop.f32.mrb[0].mxu1 }
 0x1f0   : > { %v1001_v21 = vadd.f32 %v2080_v20, %v2490_v19  ;;  %v992_v22 = vpop.f32.mrb[1].mxu1 }
 0x1f1   : > { %v993_v23 = vadd.f32 %v2490_v19, %v992_v22  ;;  %v2081_v24 = vpop.f32.mrb[2].mxu1 }
 0x1f2   : > { %v1057_v25 = vmul.f32 0.5, %v1001_v21  ;;  %v1004_v26 = vadd.f32 %v2081_v24, %v2490_v19  ;;  %v995_v27 = vpop.f32.mrb[3].mxu1  ;;  %v1908_v24 = vunpack.c.l.bf16 %v2538_v5 }
 0x1f3   : > { %v1055_v28 = vmul.f32 0.5, %v993_v23  ;;  %v996_v29 = vadd.f32 %v2490_v19, %v995_v27  ;;  %v1244_v23 = vpop.permute.xlu0 %1243 }
 0x1f4   : > { %2216 = vtanh.f32 %v1057_v25  ;;  %v1058_v30 = vmul.f32 0.5, %v1004_v26  ;;  %v2555_v26 = vld [vmem:[%s2502_s30 + $0x28] sm:$0xff]  }
 0x1f5   : > { %2218 = vtanh.f32 %v1055_v28  ;;  %v1056_v32 = vmul.f32 0.5, %v996_v29  ;;  %v1940_v29 = vunpack.c.l.bf16 %v2544_v16 }
 0x1f6   : > { %2220 = vtanh.f32 %v1058_v30 }
 0x1f7   : > { %2222 = vtanh.f32 %v1056_v32 }
 0x1fe   : > { %v2217_v43 = vpop.eup %2216 }
 0x1ff   : > { %v2219_v47 = vpop.eup %2218  ;;  %v1089_v48 = vadd.f32 1.0, %v2217_v43  ;;  %v2084_v49 = vpop.f32.mrb[4].mxu1  ;;  %v1916_v43 = vunpack.c.l.bf16 %v2555_v26 }
 0x200   : > { %v2221_v53 = vpop.eup %2220  ;;  %v1087_v54 = vadd.f32 1.0, %v2219_v47  ;;  %v1017_v55 = vadd.f32 %v2084_v49, %v2490_v19  ;;  %v1008_v56 = vpop.f32.mrb[5].mxu1  ;;  %v1944_v49 = vunpack.c.l.bf16 %v2566_v37 }
 0x201   : > { %v2223_v60 = vpop.eup %2222  ;;  %v1105_v61 = vmul.f32 %v1089_v48, %v1057_v25  ;;  %v1090_v62 = vadd.f32 1.0, %v2221_v53  ;;  %v1009_v63 = vadd.f32 %v2490_v19, %v1008_v56  ;;  %v2085_v0 = vpop.f32.mrb[6].mxu1  ;;  %v2552_v25 = vld [vmem:[%s2502_s30 + $0x20] sm:$0xff]   ;;  %v2581_v53 = vld [vmem:[%s2502_s30 + $0x38] sm:$0xff]  }
 0x202   : > { %v1103_v2 = vmul.f32 %v1087_v54, %v1055_v28  ;;  %v1088_v3 = vadd.f32 1.0, %v2223_v60  ;;  %v2531_v4 = vmul.f32 0.5, %v1017_v55  ;;  %v1020_v6 = vadd.f32 %v2085_v0, %v2490_v19  ;;  %v1011_v7 = vpop.f32.mrb[7].mxu1  ;;  %v2586_v60 = vld [vmem:[%s2507_s23 + $0x38] sm:$0xff]  }
 0x203   : > { %v1106_v8 = vmul.f32 %v1090_v62, %v1058_v30  ;;  %v2534_v9 = vmul.f32 0.5, %v1009_v63  ;;  %v1012_v10 = vadd.f32 %v2490_v19, %v1011_v7  ;;  %v1153_v11 = vmul.f32 %v1900_v40, %v1105_v61  ;;  %v2560_v30 = vld [vmem:[%s2507_s23 + $0x28] sm:$0xff]  }
 0x204   : > { %v1104_v12 = vmul.f32 %v1088_v3, %v1056_v32  ;;  %v1151_v13 = vmul.f32 %v1896_v39, %v1103_v2  ;;  %2224 = vtanh.f32 %v2531_v4  ;;  %v2541_v14 = vmul.f32 0.5, %v1020_v6 }
 0x205   : > { %2226 = vtanh.f32 %v2534_v9  ;;  %v2547_v17 = vmul.f32 0.5, %v1012_v10  ;;  %v1201_v18 = vmul.f32 %v1932_v41, %v1153_v11  ;;  %v1154_v20 = vmul.f32 %v1901_v46, %v1106_v8 }
 0x206   : > { %v1199_v21 = vmul.f32 %v1928_v44, %v1151_v13  ;;  %v1152_v22 = vmul.f32 %v1897_v45, %v1104_v12  ;;  %2228 = vtanh.f32 %v2541_v14  ;;  %v1912_v41 = vunpack.c.l.bf16 %v2552_v25 }
 0x207   : > { %2230 = vtanh.f32 %v2547_v17  ;;  %v1331_v27 = vmul.f32 %v1237_v57, %v1201_v18  ;;  %v1202_v28 = vmul.f32 %v1933_v51, %v1154_v20  ;;  %v1948_v46 = vunpack.c.l.bf16 %v2560_v30  ;;  %v2578_v51 = vld [vmem:[%s2502_s30 + $0x30] sm:$0xff]   ;;  %v1251_v57 = vpop.permute.xlu0 %1250 }
 0x208   : > { %v1329_v32 = vmul.f32 %v2496_v31, %v1199_v21  ;;  %v1200_v33 = vmul.f32 %v1929_v50, %v1152_v22  ;;  %v1917_v50 = vunpack.c.h.bf16 %v2555_v26  ;;  %v1945_v63 = vunpack.c.h.bf16 %v2566_v37 }
 0x209   : > { %v1360_v39 = vsel %vm1345_vm1, %v1331_v27, 0.0  ;;  %v1332_v40 = vmul.f32 %v1244_v23, %v1202_v28  ;;  %v1949_v0 = vunpack.c.h.bf16 %v2560_v30  ;;  %v1920_v7 = vunpack.c.l.bf16 %v2578_v51 }
 0x20a   : > { %v1346_v44 = vsel %vm1345_vm1, %v1329_v32, 0.0  ;;  %v1330_v31 = vmul.f32 %v2510_v34, %v1200_v33  ;;  %v1361_v45 = vrot.slane %v1360_v39, 4  ;;  %v1913_v34 = vunpack.c.h.bf16 %v2552_v25 }
 0x20b   : > { %v1347_v47 = vrot.slane %v1346_v44, 4  ;;  %v1367_v48 = vsel %vm1345_vm1, %v1332_v40, 0.0  ;;  %v1924_v8 = vunpack.c.l.bf16 %v2581_v53  ;;  %v1956_v20 = vunpack.c.l.bf16 %v2586_v60 }
 0x20c   : > { %v1353_v54 = vsel %vm1345_vm1, %v1330_v31, 0.0  ;;  %v1362_v55 = vadd.f32 %v1361_v45, %v1360_v39  ;;  %v1368_v56 = vrot.slane %v1367_v48, 4  ;;  %v1925_v45 = vunpack.c.h.bf16 %v2581_v53 }
 0x20d   : > { %v1348_v61 = vadd.f32 %v1347_v47, %v1346_v44  ;;  %v1354_v62 = vrot.slane %v1353_v54, 4 }
 0x20e   : > { %v2225_v2 = vpop.eup %2224  ;;  %v1363_v3 = vrot.slane %v1362_v55, 2  ;;  %v1369_v6 = vadd.f32 %v1368_v56, %v1367_v48 }
 0x20f   : > { %v2227_v10 = vpop.eup %2226  ;;  %v1349_v11 = vrot.slane %v1348_v61, 2  ;;  %v1093_v12 = vadd.f32 1.0, %v2225_v2  ;;  %v1355_v13 = vadd.f32 %v1354_v62, %v1353_v54  ;;  %v2088_v18 = vpop.f32.mrb[8].mxu1 }
 0x210   : > { %v2229_v21 = vpop.eup %2228  ;;  %v1091_v22 = vadd.f32 1.0, %v2227_v10  ;;  %v1364_v23 = vadd.f32 %v1363_v3, %v1362_v55  ;;  %v1370_v27 = vrot.slane %v1369_v6, 2  ;;  %v1033_v28 = vadd.f32 %v2088_v18, %v2490_v19  ;;  %v1024_v32 = vpop.f32.mrb[9].mxu1 }
 0x211   : > { %v2231_v33 = vpop.eup %2230  ;;  %v1350_v39 = vadd.f32 %v1349_v11, %v1348_v61  ;;  %v1109_v40 = vmul.f32 %v1093_v12, %v2531_v4  ;;  %v1356_v44 = vrot.slane %v1355_v13, 2  ;;  %v2089_v31 = vpop.f32.mrb[10].mxu1  ;;  %v1094_v10 = vadd.f32 1.0, %v2229_v21 }
 0x212   : > { %v1107_v47 = vmul.f32 %v1091_v22, %v2534_v9  ;;  %v1092_v48 = vadd.f32 1.0, %v2231_v33  ;;  %v1365_v54 = vrot.slane %v1364_v23, 1  ;;  %v1371_v56 = vadd.f32 %v1370_v27, %v1369_v6  ;;  %v1258_v62 = vpop.permute.xlu0 %1257  ;;  %v1027_v2 = vpop.f32.mrb[11].mxu1 }
 0x213   : > { %v1351_v55 = vrot.slane %v1350_v39, 1  ;;  %v1357_v3 = vadd.f32 %v1356_v44, %v1355_v13  ;;  %v2597_v18 = vmul.f32 0.5, %v1033_v28  ;;  %v1025_v6 = vadd.f32 %v2490_v19, %v1024_v32 }
 0x214   : > { %v1108_v4 = vmul.f32 %v1092_v48, %v2547_v17  ;;  %v1366_v61 = vadd.f32 %v1365_v54, %v1364_v23  ;;  %v1372_v11 = vrot.slane %v1371_v56, 1  ;;  %v1155_v9 = vmul.f32 %v1904_v52, %v1107_v47  ;;  %v2617_v54 = vld [vmem:[%s2507_s23 + $0x30] sm:$0xff]   ;;  %s484_s23 = scalar_lea.vmem %s2781_s12, %s1834_s15 }
 0x215   : > { %v1352_v12 = vadd.f32 %v1351_v55, %v1350_v39  ;;  %v1358_v22 = vrot.slane %v1357_v3, 1  ;;  %2232 = vtanh.f32 %v2597_v18  ;;  %v2610_v52 = vmul.f32 0.5, %v1025_v6 }
 0x216   : > { %v1460_v13 = vmul.f32 0.125, %v1366_v61  ;;  %v1373_v21 = vadd.f32 %v1372_v11, %v1371_v56  ;;  %v1203_v27 = vmul.f32 %v1936_v58, %v1155_v9  ;;  %v1156_v17 = vmul.f32 %v1905_v59, %v1108_v4  ;;  %v1265_v48 = vpop.permute.xlu0 %1264  ;;  %v2622_v59 = vpop.permute.xlu1 %1285 }
 0x217   : > { %v1458_v23 = vmul.f32 0.125, %v1352_v12  ;;  %v1359_v28 = vadd.f32 %v1358_v22, %v1357_v3  ;;  %v1036_v33 = vadd.f32 %v2089_v31, %v2490_v19  ;;  %v1110_v39 = vmul.f32 %v1094_v10, %v2541_v14 }
 0x218   : > { %v1461_v44 = vmul.f32 0.125, %v1373_v21  ;;  %v1333_v47 = vmul.f32 %v1251_v57, %v1203_v27  ;;  %v1204_v32 = vmul.f32 %v1937_v1, %v1156_v17  ;;  %2234 = vtanh.f32 %v2610_v52 }
 0x219   : > { %v1474_v58 = vpack.c.bf16 %v1458_v23, %v1458_v23  ;;  %v1459_v56 = vmul.f32 0.125, %v1359_v28  ;;  %v2620_v38 = vmul.f32 0.5, %v1036_v33  ;;  %v1476_v55 = vpack.c.bf16 %v1460_v13, %v1460_v13 }
 0x21a   : > { %v1477_v31 = vpack.c.bf16 %v1461_v44, %v1461_v44  ;;  %v1374_v14 = vsel %vm1345_vm1, %v1333_v47, 0.0  ;;  %v1334_v3 = vmul.f32 %v1258_v62, %v1204_v32  ;;  %v1952_v42 = vunpack.c.l.bf16 %v2617_v54  ;;  %v1272_v17 = vpop.permute.xlu0 %1271  ;;  %v2640_v44 = vpop.permute.xlu1 %1292 }
 0x21b   : > { %v1475_v57 = vpack.c.bf16 %v1459_v56, %v1459_v56  ;;  %v1375_v10 = vrot.slane %v1374_v14, 4  ;;  %2236 = vtanh.f32 %v2620_v38  ;;  %v1521_v1 = vunpack.c.l.b16 %v1474_v58 }
 0x21c   : > { %v1381_v4 = vsel %vm1345_vm1, %v1334_v3, 0.0  ;;  %v1028_v61 = vadd.f32 %v2490_v19, %v1027_v2  ;;  %v1157_v11 = vmul.f32 %v1908_v24, %v1109_v40  ;;  %v1158_v62 = vmul.f32 %v1909_v35, %v1110_v39 }
 0x21d   : > { %v1522_v9 = vunpack.c.l.b16 %v1475_v57  ;;  %v1376_v12 = vadd.f32 %v1375_v10, %v1374_v14  ;;  %v1382_v22 = vrot.slane %v1381_v4, 4  ;;  %v1523_v6 = vunpack.c.l.b16 %v1476_v55 }
 0x21e   : > { %v1524_v13 = vunpack.c.l.b16 %v1477_v31  ;;  %v2633_v21 = vmul.f32 0.5, %v1028_v61  ;;  %v1205_v27 = vmul.f32 %v1940_v29, %v1157_v11  ;;  %v1206_v24 = vmul.f32 %v1941_v36, %v1158_v62 }
 0x21f   : > { %v2233_v23 = vpop.eup %2232  ;;  %v1538_v2 = vsel %vm1537_vm2, %v1522_v9, %v1521_v1  ;;  %v1377_v28 = vrot.slane %v1376_v12, 2  ;;  %v1383_v33 = vadd.f32 %v1382_v22, %v1381_v4  ;;  %v2092_v40 = vpop.f32.mrb[12].mxu1 }
 0x220   : > { %v1540_v5 = vsel %vm1539_vm3, %v1523_v6, %v1538_v2  ;;  %v1097_v35 = vadd.f32 1.0, %v2233_v23  ;;  %2238 = vtanh.f32 %v2633_v21  ;;  %v1335_v39 = vmul.f32 %v1265_v48, %v1205_v27  ;;  %v1040_v47 = vpop.f32.mrb[13].mxu1  ;;  %v2655_v27 = vpop.permute.xlu1 %1299 }
 0x221   : > { %v1542_v29 = vsel %vm1541_vm4, %v1524_v13, %v1540_v5  ;;  %v1378_v32 = vadd.f32 %v1377_v28, %v1376_v12  ;;  %v1384_v58 = vrot.slane %v1383_v33, 2  ;;  %v1336_v56 = vmul.f32 %v1272_v17, %v1206_v24  ;;  %v2093_v55 = vpop.f32.mrb[14].mxu1 }
 0x222   : > { %v1113_v16 = vmul.f32 %v1097_v35, %v2597_v18  ;;  %v1388_v36 = vsel %vm1345_vm1, %v1335_v39, 0.0  ;;  %v1049_v31 = vadd.f32 %v2092_v40, %v2490_v19  ;;  %v1041_v14 = vadd.f32 %v2490_v19, %v1040_v47  ;;  %v1043_v3 = vpop.f32.mrb[15].mxu1  ;;  %v2235_v57 = vpop.eup %2234 }
 0x223   : > { %v1379_v10 = vrot.slane %v1378_v32, 1  ;;  %v1385_v48 = vadd.f32 %v1384_v58, %v1383_v33  ;;  %v1389_v1 = vrot.slane %v1388_v36, 4  ;;  %v1395_v4 = vsel %vm1345_vm1, %v1336_v56, 0.0 }
 0x224   : > { %v1095_v61 = vadd.f32 1.0, %v2235_v57  ;;  %v1396_v11 = vrot.slane %v1395_v4, 4  ;;  %v2650_v9 = vmul.f32 0.5, %v1049_v31  ;;  %v2652_v12 = vmul.f32 0.5, %v1041_v14 }
 0x225   : > { %v2237_v18 = vpop.eup %2236  ;;  %v1380_v22 = vadd.f32 %v1379_v10, %v1378_v32  ;;  %v1386_v62 = vrot.slane %v1385_v48, 1  ;;  %v1390_v6 = vadd.f32 %v1389_v1, %v1388_v36  ;;  %v1052_v13 = vadd.f32 %v2093_v55, %v2490_v19  ;;  %v2671_v10 = vpop.permute.xlu1 %1306 }
 0x226   : > { %v1111_v17 = vmul.f32 %v1095_v61, %v2610_v52  ;;  %v1098_v23 = vadd.f32 1.0, %v2237_v18  ;;  %v1397_v2 = vadd.f32 %v1396_v11, %v1395_v4  ;;  %2240 = vtanh.f32 %v2650_v9 }
 0x227   : > { %v1462_v28 = vmul.f32 0.125, %v1380_v22  ;;  %v1387_v33 = vadd.f32 %v1386_v62, %v1385_v48  ;;  %v1391_v24 = vrot.slane %v1390_v6, 2  ;;  %2242 = vtanh.f32 %v2652_v12 }
 0x228   : > { %v1114_v40 = vmul.f32 %v1098_v23, %v2620_v38  ;;  %v1398_v5 = vrot.slane %v1397_v2, 2  ;;  %v1159_v35 = vmul.f32 %v1912_v41, %v1111_v17  ;;  %v2663_v39 = vmul.f32 0.5, %v1052_v13 }
 0x229   : > { %v1478_v47 = vpack.c.bf16 %v1462_v28, %v1462_v28  ;;  %v1463_v32 = vmul.f32 0.125, %v1387_v33  ;;  %v1392_v52 = vadd.f32 %v1391_v24, %v1390_v6  ;;  %v1044_v58 = vadd.f32 %v2490_v19, %v1043_v3  ;;  %v2692_v24 = vpop.permute.xlu1 %1313 }
 0x22a   : > { %v2239_v56 = vpop.eup %2238  ;;  %v1399_v55 = vadd.f32 %v1398_v5, %v1397_v2  ;;  %v1207_v36 = vmul.f32 %v1944_v49, %v1159_v35  ;;  %2244 = vtanh.f32 %v2663_v39  ;;  %v1161_v38 = vmul.f32 %v1916_v43, %v1113_v16 }
 0x22b   : > { %v1525_v31 = vunpack.c.l.b16 %v1478_v47  ;;  %v1479_v41 = vpack.c.bf16 %v1463_v32, %v1463_v32  ;;  %v1096_v14 = vadd.f32 1.0, %v2239_v56  ;;  %v1393_v57 = vrot.slane %v1392_v52, 1 }
 0x22c   : > { %v1400_v48 = vrot.slane %v1399_v55, 1  ;;  %v1337_v19 = vmul.f32 %v2599_v15, %v1207_v36  ;;  %v2674_v3 = vmul.f32 0.5, %v1044_v58  ;;  %v1209_v49 = vmul.f32 %v1948_v46, %v1161_v38 }
 0x22d   : > { %v1544_v1 = vsel %vm1543_vm5, %v1525_v31, %v1542_v29  ;;  %v1526_v4 = vunpack.c.l.b16 %v1479_v41  ;;  %v1112_v43 = vmul.f32 %v1096_v14, %v2633_v21  ;;  %v1394_v16 = vadd.f32 %v1393_v57, %v1392_v52  ;;  %v1321_v14 = vpop.permute.xlu1 %1320 }
 0x22e   : > { %v1401_v61 = vadd.f32 %v1400_v48, %v1399_v55  ;;  %v1402_v11 = vsel %vm1345_vm1, %v1337_v19, 0.0  ;;  %2246 = vtanh.f32 %v2674_v3  ;;  %v1339_v18 = vmul.f32 %v2640_v44, %v1209_v49 }
 0x22f   : > { %v1546_v15 = vsel %vm1545_vm6, %v1526_v4, %v1544_v1  ;;  %v1464_v22 = vmul.f32 0.125, %v1394_v16  ;;  %v1403_v62 = vrot.slane %v1402_v11, 4  ;;  %v1160_v46 = vmul.f32 %v1913_v34, %v1112_v43 }
 0x230   : > { %v2241_v6 = vpop.eup %2240  ;;  %v1465_v29 = vmul.f32 0.125, %v1401_v61  ;;  %v1416_v13 = vsel %vm1345_vm1, %v1339_v18, 0.0  ;;  %v1162_v21 = vmul.f32 %v1917_v50, %v1114_v40  ;;  %v1921_v17 = vunpack.c.h.bf16 %v2578_v51 }
 0x231   : > { %v2243_v23 = vpop.eup %2242  ;;  %v1480_v2 = vpack.c.bf16 %v1464_v22, %v1464_v22  ;;  %v1404_v28 = vadd.f32 %v1403_v62, %v1402_v11  ;;  %v1101_v44 = vadd.f32 1.0, %v2241_v6  ;;  %v1208_v33 = vmul.f32 %v1945_v63, %v1160_v46 }
 0x232   : > { %v1481_v25 = vpack.c.bf16 %v1465_v29, %v1465_v29  ;;  %v1099_v34 = vadd.f32 1.0, %v2243_v23  ;;  %v1417_v5 = vrot.slane %v1416_v13, 4  ;;  %v1210_v35 = vmul.f32 %v1949_v0, %v1162_v21 }
 0x233   : > { %v1527_v47 = vunpack.c.l.b16 %v1480_v2  ;;  %v1405_v26 = vrot.slane %v1404_v28, 2  ;;  %v1117_v50 = vmul.f32 %v1101_v44, %v2650_v9  ;;  %v1338_v40 = vmul.f32 %v2622_v59, %v1208_v33 }
 0x234   : > { %v2245_v32 = vpop.eup %2244  ;;  %v1528_v52 = vunpack.c.l.b16 %v1481_v25  ;;  %v1115_v58 = vmul.f32 %v1099_v34, %v2652_v12  ;;  %v1418_v37 = vadd.f32 %v1417_v5, %v1416_v13  ;;  %v1340_v63 = vmul.f32 %v2655_v27, %v1210_v35 }
 0x235   : > { %v1548_v56 = vsel %vm1547_vm7, %v1527_v47, %v1546_v15  ;;  %v1406_v55 = vadd.f32 %v1405_v26, %v1404_v28  ;;  %v1409_v36 = vsel %vm1345_vm1, %v1338_v40, 0.0  ;;  %v1102_v30 = vadd.f32 1.0, %v2245_v32 }
 0x236   : > { %v2703_v0 = vsel %vm1549_vm8, %v1528_v52, %v1548_v56  ;;  %v1410_v38 = vrot.slane %v1409_v36, 4  ;;  %v1419_v9 = vrot.slane %v1418_v37, 2  ;;  %v1423_v59 = vsel %vm1345_vm1, %v1340_v63, 0.0 }
 0x237   : > { %v1407_v31 = vrot.slane %v1406_v55, 1  ;;  %v1118_v41 = vmul.f32 %v1102_v30, %v2663_v39  ;;  %v1424_v12 = vrot.slane %v1423_v59, 4  ;;  %v1163_v27 = vmul.f32 %v1920_v7, %v1115_v58 }
 0x238   : > { %v2247_v57 = vpop.eup %2246  ;;  %v1411_v48 = vadd.f32 %v1410_v38, %v1409_v36  ;;  %v1420_v19 = vadd.f32 %v1419_v9, %v1418_v37  ;;  %v1165_v49 = vmul.f32 %v1924_v8, %v1117_v50  ;;  %v1957_v1 = vunpack.c.h.bf16 %v2586_v60 }
 0x239   : > { %v1408_v4 = vadd.f32 %v1407_v31, %v1406_v55  ;;  %v1100_v43 = vadd.f32 1.0, %v2247_v57  ;;  %v1425_v16 = vadd.f32 %v1424_v12, %v1423_v59  ;;  %v1211_v61 = vmul.f32 %v1952_v42, %v1163_v27 }
 0x23a   : > { %v1412_v39 = vrot.slane %v1411_v48, 2  ;;  %v1421_v11 = vrot.slane %v1420_v19, 1  ;;  %v1213_v51 = vmul.f32 %v1956_v20, %v1165_v49  ;;  %v1166_v7 = vmul.f32 %v1925_v45, %v1118_v41  ;;  %v1328_v20 = vpop.permute.xlu1 %1327 }
 0x23b   : > { %v1116_v18 = vmul.f32 %v1100_v43, %v2674_v3  ;;  %v1426_v15 = vrot.slane %v1425_v16, 2  ;;  %v1341_v8 = vmul.f32 %v2671_v10, %v1211_v61  ;;  %v1953_v22 = vunpack.c.h.bf16 %v2617_v54 }
 0x23c   : > { %v1413_v62 = vadd.f32 %v1412_v39, %v1411_v48  ;;  %v1422_v46 = vadd.f32 %v1421_v11, %v1420_v19  ;;  %v1343_v6 = vmul.f32 %v1321_v14, %v1213_v51  ;;  %v1214_v29 = vmul.f32 %v1957_v1, %v1166_v7 }
 0x23d   : > { %v1466_v42 = vmul.f32 0.125, %v1408_v4  ;;  %v1427_v13 = vadd.f32 %v1426_v15, %v1425_v16  ;;  %v1430_v21 = vsel %vm1345_vm1, %v1341_v8, 0.0  ;;  %v1164_v60 = vmul.f32 %v1921_v17, %v1116_v18 }
 0x23e   : > { %v1414_v23 = vrot.slane %v1413_v62, 1  ;;  %v1468_v53 = vmul.f32 0.125, %v1422_v46  ;;  %v1431_v45 = vrot.slane %v1430_v21, 4  ;;  %v1444_v3 = vsel %vm1345_vm1, %v1343_v6, 0.0 }
 0x23f   : > { %v1428_v2 = vrot.slane %v1427_v13, 1  ;;  %v1212_v28 = vmul.f32 %v1953_v22, %v1164_v60  ;;  %v1445_v10 = vrot.slane %v1444_v3, 4  ;;  %v1344_v33 = vmul.f32 %v1328_v20, %v1214_v29 }
 0x240   : > { %v1415_v44 = vadd.f32 %v1414_v23, %v1413_v62  ;;  %v1432_v54 = vadd.f32 %v1431_v45, %v1430_v21  ;;  %v1482_v25 = vpack.c.bf16 %v1466_v42, %v1466_v42  ;;  %v1484_v26 = vpack.c.bf16 %v1468_v53, %v1468_v53 }
 0x241   : > { %v1429_v34 = vadd.f32 %v1428_v2, %v1427_v13  ;;  %v1342_v5 = vmul.f32 %v2692_v24, %v1212_v28  ;;  %v1446_v35 = vadd.f32 %v1445_v10, %v1444_v3  ;;  %v1451_v50 = vsel %vm1345_vm1, %v1344_v33, 0.0  ;;  %v2180_v3 = vld [vmem:[%s2779_s10] sm:$0xff]   ;;  %v2181_v2 = vld [vmem:[%s2779_s10 + $0x8] sm:$0xff]   ;;  %v2183_v28 = vld [vmem:[%s2779_s10 + $0x18] sm:$0xff]  }
 0x242   : > { %v1467_v47 = vmul.f32 0.125, %v1415_v44  ;;  %v1433_v17 = vrot.slane %v1432_v54, 2  ;;  %v1452_v58 = vrot.slane %v1451_v50, 4  ;;  %v1529_v38 = vunpack.c.l.b16 %v1482_v25  ;;  %v1879_v10 = vld [vmem:[%s2778_s9] ss:$0 sm:$0xff] }
 0x243   : > { %v1469_v40 = vmul.f32 0.125, %v1429_v34  ;;  %v1437_v32 = vsel %vm1345_vm1, %v1342_v5, 0.0  ;;  %v1447_v52 = vrot.slane %v1446_v35, 2  ;;  %v1531_v31 = vunpack.c.l.b16 %v1484_v26 }
 0x244   : > { %v1483_v37 = vpack.c.bf16 %v1467_v47, %v1467_v47  ;;  %v1434_v63 = vadd.f32 %v1433_v17, %v1432_v54  ;;  %v1438_v56 = vrot.slane %v1437_v32, 4  ;;  %v1453_v30 = vadd.f32 %v1452_v58, %v1451_v50 }
 0x245   : > { %v1485_v55 = vpack.c.bf16 %v1469_v40, %v1469_v40  ;;  %v1448_v36 = vadd.f32 %v1447_v52, %v1446_v35  ;;  %v2784_v45 = vmov 0.0  }
 0x246   : > { %v1530_v9 = vunpack.c.l.b16 %v1483_v37  ;;  %v1435_v24 = vrot.slane %v1434_v63, 1  ;;  %v1439_v59 = vadd.f32 %v1438_v56, %v1437_v32  ;;  %v1454_v12 = vrot.slane %v1453_v30, 2  ;;  %v1885_v37 = vld [vmem:[%s2780_s11] ss:$0 sm:$0xff] }
 0x247   : > { %v1449_v41 = vrot.slane %v1448_v36, 1  ;;  %v1532_v14 = vunpack.c.l.b16 %v1485_v55 }
 0x248   : > { %v1551_v27 = vsel %vm1537_vm2, %v1530_v9, %v1529_v38  ;;  %v1436_v57 = vadd.f32 %v1435_v24, %v1434_v63  ;;  %v1440_v48 = vrot.slane %v1439_v59, 2  ;;  %v1455_v1 = vadd.f32 %v1454_v12, %v1453_v30 }
 0x249   : > { %v1552_v19 = vsel %vm1539_vm3, %v1531_v31, %v1551_v27  ;;  %v1450_v49 = vadd.f32 %v1449_v41, %v1448_v36 }
 0x24a   : > { %v1553_v4 = vsel %vm1541_vm4, %v1532_v14, %v1552_v19  ;;  %v1470_v43 = vmul.f32 0.125, %v1436_v57  ;;  %v1441_v16 = vadd.f32 %v1440_v48, %v1439_v59  ;;  %v1456_v61 = vrot.slane %v1455_v1, 1 }
 0x24b   : > { %v1472_v51 = vmul.f32 0.125, %v1450_v49 }
 0x24c   : > { %v1486_v39 = vpack.c.bf16 %v1470_v43, %v1470_v43  ;;  %v1442_v11 = vrot.slane %v1441_v16, 1  ;;  %v1457_v7 = vadd.f32 %v1456_v61, %v1455_v1 }
 0x24d   : > { %v1488_v46 = vpack.c.bf16 %v1472_v51, %v1472_v51 }
 0x24e   : > { %v1533_v18 = vunpack.c.l.b16 %v1486_v39  ;;  %v1443_v15 = vadd.f32 %v1442_v11, %v1441_v16  ;;  %v1473_v8 = vmul.f32 0.125, %v1457_v7 }
 0x24f   : > { %v1535_v13 = vunpack.c.l.b16 %v1488_v46 }
 0x250   : > { %v1554_v22 = vsel %vm1543_vm5, %v1533_v18, %v1553_v4  ;;  %v1471_v62 = vmul.f32 0.125, %v1443_v15  ;;  %v1489_v29 = vpack.c.bf16 %v1473_v8, %v1473_v8 }
 0x252   : > { %v1487_v6 = vpack.c.bf16 %v1471_v62, %v1471_v62  ;;  %v1536_v60 = vunpack.c.l.b16 %v1489_v29 }
 0x254   : > { %v1534_v42 = vunpack.c.l.b16 %v1487_v6 }
 0x256   : > { %v1555_v21 = vsel %vm1545_vm6, %v1534_v42, %v1554_v22 }
 0x257   : > { %v1556_v20 = vsel %vm1547_vm7, %v1535_v13, %v1555_v21 }
 0x258   : > { %v1557_v23 = vsel %vm1549_vm8, %v1536_v60, %v1556_v20 }
 0x259   : > { %v1558_v53 = vpack.c.b16 %v1557_v23, %v2703_v0  ;;  %v2182_v0 = vld [vmem:[%s2779_s10 + $0x10] sm:$0xff]  }
 0x25b   : > { %2103 = vmatmul.mubr.msk.bf16.vlgmr.msra.gmra.mrb[16].mxu1 %vm1345_vm1, %v1558_v53 }
 0x25c   : > { %2114 = vmatprep.mubr.msk.bf16.mxu1 %vm2265_vm0, %v2784_v45  ;;  %2107 = vmatpush3.bf16.msra.mxu1 %v2180_v3 }
 0x25d   : > { %2108 = vmatprep.subr.bf16.mxu1 %v2784_v45 }
 0x260   : > { %2109 = vmatpush3.bf16.msra.mxu1 %v2181_v2 }
 0x261   : > { %2110 = vmatprep.subr.bf16.mxu1 %v2784_v45 }
 0x264   : > { %2111 = vmatpush3.bf16.msra.mxu1 %v2182_v0 }
 0x265   : > { %2112 = vmatprep.subr.bf16.mxu1 %v2784_v45 }
 0x268   : > { %2113 = vmatpush3.bf16.msra.mxu1 %v2183_v28 }
 0x32e   : > { %v1620_v44 = vpop.f32.mrb[16].mxu1 }
 0x32f   : > { %v1621_v54 = vadd.f32 %v1879_v10, %v1620_v44  ;;  %v2104_v33 = vpop.f32.mrb[17].mxu1 }
 0x330   : > { %v1623_v25 = vpop.f32.mrb[18].mxu1 }
 0x331   : > { %v1627_v34 = vmul.f32 0.5, %v1621_v54  ;;  %v1624_v5 = vadd.f32 %v1879_v10, %v1623_v25  ;;  %v2105_v35 = vpop.f32.mrb[19].mxu1 }
 0x333   : > { %2248 = vtanh.f32 %v1627_v34  ;;  %v1628_v47 = vmul.f32 0.5, %v1624_v5 }
 0x335   : > { %2250 = vtanh.f32 %v1628_v47 }
 0x33d   : > { %v2249_v26 = vpop.eup %2248 }
 0x33e   : > { %v1631_v17 = vadd.f32 1.0, %v2249_v26 }
 0x33f   : > { %v2251_v50 = vpop.eup %2250 }
 0x340   : > { %v1632_v40 = vadd.f32 1.0, %v2251_v50  ;;  %v1633_v32 = vmul.f32 %v1631_v17, %v1627_v34 }
 0x342   : > { %v1634_v52 = vmul.f32 %v1632_v40, %v1628_v47 }
 0x344   : > { %v1635_v58 = vpack.c.bf16 %v1634_v52, %v1633_v32 }
 0x346   : > { %2115 = vmatmul.mubr.msk.bf16.vlgmr.msra.gmra.mrb[20].mxu1 %vm1345_vm1, %v1635_v58 }
 0x419   : > { %v1712_v63 = vpop.f32.mrb[20].mxu1 }
 0x41a   : > { %v1713_v56 = vadd.f32 %v1885_v37, %v1712_v63  ;;  %v2116_v55 = vpop.f32.mrb[21].mxu1 }
 0x41b   : > { %v1715_v36 = vpop.f32.mrb[22].mxu1 }
 0x41c   : > { %v1719_v30 = vmul.f32 0.5, %v1713_v56  ;;  %v1716_v38 = vadd.f32 %v1885_v37, %v1715_v36  ;;  %v2117_v9 = vpop.f32.mrb[23].mxu1 }
 0x41e   : > { %2252 = vtanh.f32 %v1719_v30  ;;  %v1720_v24 = vmul.f32 0.5, %v1716_v38 }
 0x420   : > { %2254 = vtanh.f32 %v1720_v24 }
 0x428   : > { %v2253_v59 = vpop.eup %2252 }
 0x429   : > { %v1723_v31 = vadd.f32 1.0, %v2253_v59 }
 0x42a   : > { %v2255_v41 = vpop.eup %2254 }
 0x42b   : > { %v1725_v12 = vmul.f32 %v1723_v31, %v1719_v30  ;;  %v1724_v27 = vadd.f32 1.0, %v2255_v41 }
 0x42d   : > { %1727 = vst.msk [vmem:[%s484_s23] sm:$0xff] %vm1345_vm1, %v1725_v12  ;;  %v1726_v14 = vmul.f32 %v1724_v27, %v1720_v24 }
 0x42f   : > { %1728 = vst.msk [vmem:[%s484_s23 + $0x8] sm:$0xff] %vm1345_vm1, %v1726_v14 }
 0x430 PF: > { %s22_s21 = sadd.s32 1, %s2262_s21  }
 0x431   : > { %p19_p5 = scmp.ge.s32.totalorder %s22_s21, 5  }
 0x433   :  { %21 = sbr.rel (!%p19_p5) target bundleno = 1 (0x1), region = 107 }

</bundles_post_ra>
